<compile_context>
chip_gen: v5e
topology: v5e:2x2
jax: 0.10.0
libtpu: 0.0.40
codegen_flags: <defaults>
</compile_context>

<pallas_src>
import functools

import jax
import jax.numpy as jnp
from jax import lax
from jax.experimental import pallas as pl
from jax.experimental.pallas import tpu as pltpu

# ----- "args" (hyperparameters) -------------------------------------------
EPS = 1e-8          # args.eps
GAMMA = 1.0         # args.gamma
L2 = 0.01           # args.l2
X_DIM = 32          # args.xdim
DH1 = 32            # args.dh1
DH2 = 16            # args.dh2  (> 0, so fc3 is used; fused into fc2 in the wrapper)
N_CLASSES = 4       # args.n_classes
BATCH = 8           # demo batch size N
# kernel == 'gaussian' (default branch of the PyTorch module)


def _round_up8(v):
    return -(-v // 8) * 8


def dwac_kernel(xq_ref, xr_ref, slab_ref, out_ref,
                zq_s, aq_s, cd_s, *,
                eps, gamma, l2, n_total, n_classes, xdim, dh1,
                r_w1, r_b1, r_w23, r_b23):
    qi = pl.program_id(0)
    ki = pl.program_id(1)
    nk = pl.num_programs(1)
    c = n_classes
    sqrt_gamma = gamma ** 0.5

    # --- unpack parameters from the single packed slab ------------------------
    w1 = slab_ref[r_w1:r_w1 + xdim, :dh1]          # (xdim, dh1)
    b1 = slab_ref[r_b1:r_b1 + 1, :dh1]             # (1, dh1)
    w23 = slab_ref[r_w23:r_w23 + dh1, :c]          # (dh1, C)   fc2 o fc3 fused
    b23 = slab_ref[r_b23:r_b23 + 1, :c]            # (1, C)

    def representation(xblk):
        # fc1 -> relu -> (fc2 o fc3 fused). Dropout layers are eval-mode identity.
        h1 = jnp.maximum(
            jnp.dot(xblk, w1, preferred_element_type=jnp.float32) + b1, 0.0)
        return jnp.dot(h1, w23, preferred_element_type=jnp.float32) + b23

    # --- query block: computed once per query block, cached in scratch --------
    @pl.when(ki == 0)
    def _():
        zq = representation(xq_ref[:, :xdim])
        zq_s[...] = zq
        aq_s[...] = (0.5 * gamma) * jnp.sum(zq * zq, axis=1, keepdims=True)
        cd_s[...] = jnp.zeros(cd_s.shape, cd_s.dtype)

    # --- reference block (recomputed per step; O(T * xdim * dh1), cheap vs exp) -
    zr = representation(xr_ref[:, :xdim])
    zr_sc = zr * sqrt_gamma
    ar = 0.5 * jnp.sum(zr_sc * zr_sc, axis=1, keepdims=True)      # (T, 1)
    zq_sc = zq_s[...] * sqrt_gamma

    # gram' = gamma * z_q z_r^T via MXU, contracting dim 1 of both operands.
    gram = lax.dot_general(zq_sc, zr_sc,
                           dimension_numbers=(((1,), (1,)), ((), ())),
                           preferred_element_type=jnp.float32)    # (T, T)
    # kmat = exp(gram' - a_i - a_j): two subtracts + one exp per element.
    arg = gram - aq_s[...] - ar.T

    # one-hot class mask for the reference block (labels ride as the last x column)
    yr = xr_ref[:, xdim:xdim + 1].astype(jnp.int32)               # (T, 1)
    mask_r = (lax.broadcasted_iota(jnp.int32, (zr.shape[0], c), 1)
              == yr).astype(jnp.float32)                          # (T, C)

    # off-diagonal tiles: lean path, no diag masking work
    @pl.when(qi != ki)
    def _():
        cd_s[...] += jnp.dot(jnp.exp(arg), mask_r,
                             preferred_element_type=jnp.float32)

    # diagonal tiles only: zero self-similarity before accumulating
    @pl.when(qi == ki)
    def _():
        kd = jnp.exp(arg)
        rr = lax.broadcasted_iota(jnp.int32, kd.shape, 0)
        cc = lax.broadcasted_iota(jnp.int32, kd.shape, 1)
        kd = jnp.where(rr == cc, 0.0, kd)
        cd_s[...] += jnp.dot(kd, mask_r, preferred_element_type=jnp.float32)

    # --- finalize: probs, z and per-row loss for this query block -------------
    @pl.when(ki == nk - 1)
    def _():
        cd = cd_s[...] + eps
        logp = jnp.log(cd) - jnp.log(jnp.sum(cd, axis=1, keepdims=True))
        zq = zq_s[...]
        yq = xq_ref[:, xdim:xdim + 1].astype(jnp.int32)
        mask_q = (lax.broadcasted_iota(jnp.int32, (zq.shape[0], c), 1)
                  == yq).astype(jnp.float32)
        # NLLLoss(size_average=False) contribution of each row.
        per_row = -jnp.sum(logp * mask_q, axis=1, keepdims=True)
        if l2 > 0:
            # l2 * mean(z^2): reuse a_i = 0.5*gamma*||z_i||^2  ->  ||z_i||^2 = 2*a_i/gamma
            per_row = per_row + (2.0 * l2 / (gamma * n_total * c)) * aq_s[...]
        out_ref[...] = jnp.concatenate([logp, zq, per_row], axis=1)


def pack_params(params, n_classes):
    """Pack (w1, b1, w2@w3, b2@w3+b3) into one 8-row-aligned f32 slab."""
    w1, b1, w2, b2, w3, b3 = params
    # Algebraic fusion of fc2/fc3 (no nonlinearity between them).
    w23 = jnp.dot(w2, w3)                     # (DH1, C)
    b23 = jnp.dot(b2, w3) + b3                # (1, C)
    xdim, dh1 = w1.shape
    c = n_classes
    r_w1 = 0
    r_b1 = _round_up8(xdim)
    r_w23 = _round_up8(r_b1 + 1)
    r_b23 = _round_up8(r_w23 + dh1)
    rows = _round_up8(r_b23 + 1)
    cols = max(dh1, c)
    slab = jnp.zeros((rows, cols), jnp.float32)
    slab = slab.at[r_w1:r_w1 + xdim, :dh1].set(w1)
    slab = slab.at[r_b1:r_b1 + 1, :dh1].set(b1)
    slab = slab.at[r_w23:r_w23 + dh1, :c].set(w23)
    slab = slab.at[r_b23:r_b23 + 1, :c].set(b23)
    offsets = dict(xdim=xdim, dh1=dh1,
                   r_w1=r_w1, r_b1=r_b1, r_w23=r_w23, r_b23=r_b23)
    return slab, offsets


def dwac_forward(x, y, params, *, eps=EPS, gamma=GAMMA, l2=L2,
                 n_classes=N_CLASSES, tile=None):
    n, xdim = x.shape
    c = n_classes
    slab, off = pack_params(params, n_classes)

    # Tile for the (query, reference) grid; TQ == TK so diagonal tiles are qi == ki.
    if tile is None:
        tile = n if n <= 512 else 512
    if tile != n:
        assert n % tile == 0 and tile % 8 == 0, \
            "batch must be a multiple of an 8-aligned tile (pad ragged batches)"
    nq = n // tile
    nk = n // tile

    # Labels ride as one extra (exactly representable) float column of x.
    x_aug = jnp.concatenate(
        [x.astype(jnp.float32), y.astype(jnp.float32).reshape(n, 1)], axis=1)

    kernel = functools.partial(
        dwac_kernel, eps=eps, gamma=gamma, l2=l2,
        n_total=n, n_classes=c, **off)

    grid_spec = pltpu.PrefetchScalarGridSpec(
        num_scalar_prefetch=0,
        grid=(nq, nk),
        in_specs=[
            pl.BlockSpec((tile, xdim + 1), lambda qi, ki: (qi, 0)),   # x_aug, query view
            pl.BlockSpec((tile, xdim + 1), lambda qi, ki: (ki, 0)),   # x_aug, ref view
            pl.BlockSpec(slab.shape, lambda qi, ki: (0, 0)),          # packed params
        ],
        out_specs=pl.BlockSpec((tile, 2 * c + 1), lambda qi, ki: (qi, 0)),
        scratch_shapes=[
            pltpu.VMEM((tile, c), jnp.float32),   # z of the query block
            pltpu.VMEM((tile, 1), jnp.float32),   # a_i = 0.5*gamma*||z_i||^2
            pltpu.VMEM((tile, c), jnp.float32),   # class_dists accumulator
        ],
    )

    packed = pl.pallas_call(
        kernel,
        out_shape=jax.ShapeDtypeStruct((n, 2 * c + 1), jnp.float32),
        grid_spec=grid_spec,
        compiler_params=pltpu.CompilerParams(
            dimension_semantics=("parallel", "arbitrary")),
    )(x_aug, x_aug, slab)

    probs = packed[:, :c]
    z = packed[:, c:2 * c]
    total_loss = jnp.sum(packed[:, 2 * c])
    return {"probs": probs, "loss": total_loss / n,
            "total_loss": total_loss, "z": z}


def init_params(key):
    """PyTorch-style nn.Linear init: U(-1/sqrt(fan_in), 1/sqrt(fan_in))."""
    def linear(k, fan_in, fan_out):
        kw, kb = jax.random.split(k)
        bound = 1.0 / float(fan_in) ** 0.5
        w = jax.random.uniform(kw, (fan_in, fan_out), jnp.float32, -bound, bound)
        b = jax.random.uniform(kb, (1, fan_out), jnp.float32, -bound, bound)
        return w, b

    k1, k2, k3 = jax.random.split(key, 3)
    w1, b1 = linear(k1, X_DIM, DH1)
    w2, b2 = linear(k2, DH1, DH2)
    w3, b3 = linear(k3, DH2, N_CLASSES)
    return (w1, b1, w2, b2, w3, b3)


def dwac_reference(x, y, params, *, eps=EPS, gamma=GAMMA, l2=L2,
                   n_classes=N_CLASSES):
    """Pure-JAX reference following the (unfused) PyTorch module exactly."""
    w1, b1, w2, b2, w3, b3 = params
    h1 = jnp.maximum(x @ w1 + b1, 0.0)
    z = (h1 @ w2 + b2) @ w3 + b3
    norm = jnp.sum(z * z, axis=1, keepdims=True)
    dists = -2.0 * (z @ z.T) + norm + norm.T
    kmat = jnp.exp(-0.5 * gamma * dists)
    kmat = kmat * (1.0 - jnp.eye(z.shape[0], dtype=jnp.float32))
    mask = jax.nn.one_hot(y, n_classes, dtype=jnp.float32)
    class_dists = kmat @ mask + eps
    probs = jnp.log(class_dists / jnp.sum(class_dists, axis=1, keepdims=True))
    total = -jnp.sum(probs * mask)
    if l2 > 0:
        total = total + jnp.mean(z * z) * l2
    return probs, z, total


if __name__ == "__main__":
    key = jax.random.PRNGKey(0)
    kx, ky, kp, kx2, ky2 = jax.random.split(key, 5)
    params = init_params(kp)

    # --- demo shape: collapses to a single (1 x 1) grid block -----------------
    x = jax.random.normal(kx, (BATCH, X_DIM), dtype=jnp.float32)
    y = jax.random.randint(ky, (BATCH,), 0, N_CLASSES, dtype=jnp.int32)

    out = dwac_forward(x, y, params)
    jax.block_until_ready(out)

    assert out["probs"].shape == (BATCH, N_CLASSES)
    assert out["z"].shape == (BATCH, N_CLASSES)
    assert out["total_loss"].shape == ()

    ref_probs, ref_z, ref_total = dwac_reference(x, y, params)
    assert jnp.allclose(out["probs"], ref_probs, rtol=1e-3, atol=1e-3)
    assert jnp.allclose(out["z"], ref_z, rtol=1e-3, atol=1e-3)
    assert jnp.allclose(out["total_loss"], ref_total, rtol=1e-3, atol=1e-3)

    # --- larger batch exercising the real (nq x nk) grid + accumulator path ---
    n2 = 32
    x2 = jax.random.normal(kx2, (n2, X_DIM), dtype=jnp.float32)
    y2 = jax.random.randint(ky2, (n2,), 0, N_CLASSES, dtype=jnp.int32)

    out2 = dwac_forward(x2, y2, params, tile=8)   # 4 x 4 grid of tiles
    jax.block_until_ready(out2)

    ref_probs2, ref_z2, ref_total2 = dwac_reference(x2, y2, params)
    assert jnp.allclose(out2["probs"], ref_probs2, rtol=1e-3, atol=1e-3)
    assert jnp.allclose(out2["z"], ref_z2, rtol=1e-3, atol=1e-3)
    assert jnp.allclose(out2["total_loss"], ref_total2, rtol=1e-3, atol=1e-3)

    print("KERNEL_OK")
</pallas_src>

<mosaic_0001>
module attributes {stable_mosaic.version = 11 : i64} {
  func.func @dwac_kernel(%arg0: i32, %arg1: i32, %arg2: memref<8x33xf32, #tpu.memory_space<vmem>>, %arg3: memref<8x33xf32, #tpu.memory_space<vmem>>, %arg4: memref<80x32xf32, #tpu.memory_space<vmem>>, %arg5: memref<8x9xf32, #tpu.memory_space<vmem>>, %arg6: memref<8x4xf32, #tpu.memory_space<vmem>>, %arg7: memref<8x1xf32, #tpu.memory_space<vmem>>, %arg8: memref<8x4xf32, #tpu.memory_space<vmem>>) attributes {dimension_semantics = [#tpu.dimension_semantics<parallel>, #tpu.dimension_semantics<arbitrary>], iteration_bounds = array<i64: 1, 1>, scalar_prefetch = 0 : i64, scratch_operands = 3 : i64, tpu.core_type = #tpu.core_type<tc>, window_params = [{transform_indices = @transform_0, window_bounds = array<i64: 8, 33>}, {transform_indices = @transform_1, window_bounds = array<i64: 8, 33>}, {pipeline_mode = #tpu.pipeline_mode<synchronous>, transform_indices = @transform_2, window_bounds = array<i64: 80, 32>}, {transform_indices = @transform_3, window_bounds = array<i64: 8, 9>}]} {
    %c0 = arith.constant 0 : index
    %c0_0 = arith.constant 0 : index
    %0 = vector.load %arg4[%c0, %c0_0] : memref<80x32xf32, #tpu.memory_space<vmem>>, vector<32x32xf32>
    %c32 = arith.constant 32 : index
    %c0_1 = arith.constant 0 : index
    %1 = vector.load %arg4[%c32, %c0_1] : memref<80x32xf32, #tpu.memory_space<vmem>>, vector<1x32xf32>
    %c40 = arith.constant 40 : index
    %c0_2 = arith.constant 0 : index
    %2 = vector.load %arg4[%c40, %c0_2] : memref<80x32xf32, #tpu.memory_space<vmem>>, vector<32x4xf32>
    %c72 = arith.constant 72 : index
    %c0_3 = arith.constant 0 : index
    %3 = vector.load %arg4[%c72, %c0_3] : memref<80x32xf32, #tpu.memory_space<vmem>>, vector<1x4xf32>
    %c0_i32 = arith.constant 0 : i32
    %4 = arith.cmpi eq, %arg1, %c0_i32 : i32
    %5 = arith.extui %4 : i1 to i32
    %c0_i32_4 = arith.constant 0 : i32
    %6 = arith.cmpi ne, %5, %c0_i32_4 : i32
    scf.if %6 {
      %c0_24 = arith.constant 0 : index
      %c0_25 = arith.constant 0 : index
      %49 = vector.load %arg2[%c0_24, %c0_25] : memref<8x33xf32, #tpu.memory_space<vmem>>, vector<8x32xf32>
      %cst_26 = arith.constant dense<0.000000e+00> : vector<8x32xf32>
      %50 = tpu.matmul %49, %0, %cst_26 {dimension_numbers = #tpu.dot_dimension_numbers<[1], [0], [0], [1], [0, 0, 1, 1], [], []>} : vector<8x32xf32>, vector<32x32xf32>, vector<8x32xf32> -> vector<8x32xf32>
      %51 = vector.broadcast %1 : vector<1x32xf32> to vector<8x32xf32>
      %52 = arith.addf %50, %51 : vector<8x32xf32>
      %cst_27 = arith.constant 0.000000e+00 : f32
      %53 = vector.broadcast %cst_27 : f32 to vector<8x32xf32>
      %54 = arith.maximumf %52, %53 : vector<8x32xf32>
      %cst_28 = arith.constant dense<0.000000e+00> : vector<8x4xf32>
      %55 = tpu.matmul %54, %2, %cst_28 {dimension_numbers = #tpu.dot_dimension_numbers<[1], [0], [0], [1], [0, 0, 1, 1], [], []>} : vector<8x32xf32>, vector<32x4xf32>, vector<8x4xf32> -> vector<8x4xf32>
      %56 = vector.broadcast %3 : vector<1x4xf32> to vector<8x4xf32>
      %57 = arith.addf %55, %56 : vector<8x4xf32>
      %c0_29 = arith.constant 0 : index
      %c0_30 = arith.constant 0 : index
      %58 = vector.load %arg6[%c0_29, %c0_30] : memref<8x4xf32, #tpu.memory_space<vmem>>, vector<8x4xf32>
      tpu.vector_store %arg6[%c0_29, %c0_30], %57 {strides = array<i32>} : memref<8x4xf32, #tpu.memory_space<vmem>>, vector<8x4xf32>,
      %59 = arith.mulf %57, %57 : vector<8x4xf32>
      %cst_31 = arith.constant dense<0.000000e+00> : vector<8xf32>
      %60 = vector.multi_reduction <add>, %59, %cst_31 [1] : vector<8x4xf32> to vector<8xf32>
      %61 = vector.shape_cast %60 : vector<8xf32> to vector<8x1xf32>
      %cst_32 = arith.constant 5.000000e-01 : f32
      %62 = vector.broadcast %cst_32 : f32 to vector<8x1xf32>
      %63 = arith.mulf %62, %61 : vector<8x1xf32>
      %c0_33 = arith.constant 0 : index
      %c0_34 = arith.constant 0 : index
      %64 = vector.load %arg7[%c0_33, %c0_34] : memref<8x1xf32, #tpu.memory_space<vmem>>, vector<8x1xf32>
      tpu.vector_store %arg7[%c0_33, %c0_34], %63 {strides = array<i32>} : memref<8x1xf32, #tpu.memory_space<vmem>>, vector<8x1xf32>,
      %cst_35 = arith.constant 0.000000e+00 : f32
      %65 = vector.broadcast %cst_35 : f32 to vector<8x4xf32>
      %c0_36 = arith.constant 0 : index
      %c0_37 = arith.constant 0 : index
      %66 = vector.load %arg8[%c0_36, %c0_37] : memref<8x4xf32, #tpu.memory_space<vmem>>, vector<8x4xf32>
      tpu.vector_store %arg8[%c0_36, %c0_37], %65 {strides = array<i32>} : memref<8x4xf32, #tpu.memory_space<vmem>>, vector<8x4xf32>,
    } else {
    }
    %c0_5 = arith.constant 0 : index
    %c0_6 = arith.constant 0 : index
    %7 = vector.load %arg3[%c0_5, %c0_6] : memref<8x33xf32, #tpu.memory_space<vmem>>, vector<8x32xf32>
    %cst = arith.constant dense<0.000000e+00> : vector<8x32xf32>
    %8 = tpu.matmul %7, %0, %cst {dimension_numbers = #tpu.dot_dimension_numbers<[1], [0], [0], [1], [0, 0, 1, 1], [], []>} : vector<8x32xf32>, vector<32x32xf32>, vector<8x32xf32> -> vector<8x32xf32>
    %9 = vector.broadcast %1 : vector<1x32xf32> to vector<8x32xf32>
    %10 = arith.addf %8, %9 : vector<8x32xf32>
    %cst_7 = arith.constant 0.000000e+00 : f32
    %11 = vector.broadcast %cst_7 : f32 to vector<8x32xf32>
    %12 = arith.maximumf %10, %11 : vector<8x32xf32>
    %cst_8 = arith.constant dense<0.000000e+00> : vector<8x4xf32>
    %13 = tpu.matmul %12, %2, %cst_8 {dimension_numbers = #tpu.dot_dimension_numbers<[1], [0], [0], [1], [0, 0, 1, 1], [], []>} : vector<8x32xf32>, vector<32x4xf32>, vector<8x4xf32> -> vector<8x4xf32>
    %14 = vector.broadcast %3 : vector<1x4xf32> to vector<8x4xf32>
    %15 = arith.addf %13, %14 : vector<8x4xf32>
    %cst_9 = arith.constant 1.000000e+00 : f32
    %16 = vector.broadcast %cst_9 : f32 to vector<8x4xf32>
    %17 = arith.mulf %15, %16 : vector<8x4xf32>
    %18 = arith.mulf %17, %17 : vector<8x4xf32>
    %cst_10 = arith.constant dense<0.000000e+00> : vector<8xf32>
    %19 = vector.multi_reduction <add>, %18, %cst_10 [1] : vector<8x4xf32> to vector<8xf32>
    %20 = vector.shape_cast %19 : vector<8xf32> to vector<8x1xf32>
    %cst_11 = arith.constant 5.000000e-01 : f32
    %21 = vector.broadcast %cst_11 : f32 to vector<8x1xf32>
    %22 = arith.mulf %21, %20 : vector<8x1xf32>
    %c0_12 = arith.constant 0 : index
    %c0_13 = arith.constant 0 : index
    %23 = vector.load %arg6[%c0_12, %c0_13] : memref<8x4xf32, #tpu.memory_space<vmem>>, vector<8x4xf32>
    %cst_14 = arith.constant 1.000000e+00 : f32
    %24 = vector.broadcast %cst_14 : f32 to vector<8x4xf32>
    %25 = arith.mulf %23, %24 : vector<8x4xf32>
    %cst_15 = arith.constant dense<0.000000e+00> : vector<8x8xf32>
    %26 = tpu.matmul %25, %17, %cst_15 {dimension_numbers = #tpu.dot_dimension_numbers<[1], [1], [0], [0], [0, 0, 1, 0], [], []>} : vector<8x4xf32>, vector<8x4xf32>, vector<8x8xf32> -> vector<8x8xf32>
    %c0_16 = arith.constant 0 : index
    %c0_17 = arith.constant 0 : index
    %27 = vector.load %arg7[%c0_16, %c0_17] : memref<8x1xf32, #tpu.memory_space<vmem>>, vector<8x1xf32>
    %28 = vector.broadcast %27 : vector<8x1xf32> to vector<8x8xf32>
    %29 = arith.subf %26, %28 : vector<8x8xf32>
    %30 = tpu.transpose %22, [1, 0] : vector<8x1xf32> -> vector<1x8xf32>
    %31 = vector.broadcast %30 : vector<1x8xf32> to vector<8x8xf32>
    %32 = arith.subf %29, %31 : vector<8x8xf32>
    %c0_18 = arith.constant 0 : index
    %c32_19 = arith.constant 32 : index
    %33 = vector.load %arg3[%c0_18, %c32_19] : memref<8x33xf32, #tpu.memory_space<vmem>>, vector<8x1xf32>
    %34 = arith.fptosi %33 : vector<8x1xf32> to vector<8x1xi32>
    %35 = tpu.iota {dimensions = array<i32: 1>} : vector<8x4xi32>
    %36 = vector.broadcast %34 : vector<8x1xi32> to vector<8x4xi32>
    %37 = arith.cmpi eq, %35, %36 : vector<8x4xi32>
    %38 = arith.extui %37 : vector<8x4xi1> to vector<8x4xi32>
    %39 = arith.sitofp %38 : vector<8x4xi32> to vector<8x4xf32>
    %40 = arith.cmpi ne, %arg0, %arg1 : i32
    %41 = arith.extui %40 : i1 to i32
    %c0_i32_20 = arith.constant 0 : i32
    %42 = arith.cmpi ne, %41, %c0_i32_20 : i32
    scf.if %42 {
      %c0_24 = arith.constant 0 : index
      %c0_25 = arith.constant 0 : index
      %49 = vector.load %arg8[%c0_24, %c0_25] : memref<8x4xf32, #tpu.memory_space<vmem>>, vector<8x4xf32>
      %50 = math.exp %32 : vector<8x8xf32>
      %cst_26 = arith.constant dense<0.000000e+00> : vector<8x4xf32>
      %51 = tpu.matmul %50, %39, %cst_26 {dimension_numbers = #tpu.dot_dimension_numbers<[1], [0], [0], [1], [0, 0, 1, 1], [], []>} : vector<8x8xf32>, vector<8x4xf32>, vector<8x4xf32> -> vector<8x4xf32>
      %52 = arith.addf %49, %51 : vector<8x4xf32>
      %c0_27 = arith.constant 0 : index
      %c0_28 = arith.constant 0 : index
      %53 = vector.load %arg8[%c0_27, %c0_28] : memref<8x4xf32, #tpu.memory_space<vmem>>, vector<8x4xf32>
      tpu.vector_store %arg8[%c0_27, %c0_28], %52 {strides = array<i32>} : memref<8x4xf32, #tpu.memory_space<vmem>>, vector<8x4xf32>,
    } else {
    }
    %43 = arith.cmpi eq, %arg0, %arg1 : i32
    %44 = arith.extui %43 : i1 to i32
    %c0_i32_21 = arith.constant 0 : i32
    %45 = arith.cmpi ne, %44, %c0_i32_21 : i32
    scf.if %45 {
      %49 = math.exp %32 : vector<8x8xf32>
      %50 = tpu.iota {dimensions = array<i32: 0>} : vector<8x8xi32>
      %51 = tpu.iota {dimensions = array<i32: 1>} : vector<8x8xi32>
      %52 = arith.cmpi eq, %50, %51 : vector<8x8xi32>
      %cst_24 = arith.constant 0.000000e+00 : f32
      %53 = vector.broadcast %cst_24 : f32 to vector<8x8xf32>
      %54 = arith.select %52, %53, %49 : vector<8x8xi1>, vector<8x8xf32>
      %c0_25 = arith.constant 0 : index
      %c0_26 = arith.constant 0 : index
      %55 = vector.load %arg8[%c0_25, %c0_26] : memref<8x4xf32, #tpu.memory_space<vmem>>, vector<8x4xf32>
      %cst_27 = arith.constant dense<0.000000e+00> : vector<8x4xf32>
      %56 = tpu.matmul %54, %39, %cst_27 {dimension_numbers = #tpu.dot_dimension_numbers<[1], [0], [0], [1], [0, 0, 1, 1], [], []>} : vector<8x8xf32>, vector<8x4xf32>, vector<8x4xf32> -> vector<8x4xf32>
      %57 = arith.addf %55, %56 : vector<8x4xf32>
      %c0_28 = arith.constant 0 : index
      %c0_29 = arith.constant 0 : index
      %58 = vector.load %arg8[%c0_28, %c0_29] : memref<8x4xf32, #tpu.memory_space<vmem>>, vector<8x4xf32>
      tpu.vector_store %arg8[%c0_28, %c0_29], %57 {strides = array<i32>} : memref<8x4xf32, #tpu.memory_space<vmem>>, vector<8x4xf32>,
    } else {
    }
    %c0_i32_22 = arith.constant 0 : i32
    %46 = arith.cmpi eq, %arg1, %c0_i32_22 : i32
    %47 = arith.extui %46 : i1 to i32
    %c0_i32_23 = arith.constant 0 : i32
    %48 = arith.cmpi ne, %47, %c0_i32_23 : i32
    scf.if %48 {
      %c0_24 = arith.constant 0 : index
      %c0_25 = arith.constant 0 : index
      %49 = vector.load %arg8[%c0_24, %c0_25] : memref<8x4xf32, #tpu.memory_space<vmem>>, vector<8x4xf32>
      %cst_26 = arith.constant 9.99999993E-9 : f32
      %50 = vector.broadcast %cst_26 : f32 to vector<8x4xf32>
      %51 = arith.addf %49, %50 : vector<8x4xf32>
      %52 = math.log %51 : vector<8x4xf32>
      %cst_27 = arith.constant dense<0.000000e+00> : vector<8xf32>
      %53 = vector.multi_reduction <add>, %51, %cst_27 [1] : vector<8x4xf32> to vector<8xf32>
      %54 = vector.shape_cast %53 : vector<8xf32> to vector<8x1xf32>
      %55 = math.log %54 : vector<8x1xf32>
      %56 = vector.broadcast %55 : vector<8x1xf32> to vector<8x4xf32>
      %57 = arith.subf %52, %56 : vector<8x4xf32>
      %c0_28 = arith.constant 0 : index
      %c0_29 = arith.constant 0 : index
      %58 = vector.load %arg6[%c0_28, %c0_29] : memref<8x4xf32, #tpu.memory_space<vmem>>, vector<8x4xf32>
      %c0_30 = arith.constant 0 : index
      %c32_31 = arith.constant 32 : index
      %59 = vector.load %arg2[%c0_30, %c32_31] : memref<8x33xf32, #tpu.memory_space<vmem>>, vector<8x1xf32>
      %60 = arith.fptosi %59 : vector<8x1xf32> to vector<8x1xi32>
      %61 = tpu.iota {dimensions = array<i32: 1>} : vector<8x4xi32>
      %62 = vector.broadcast %60 : vector<8x1xi32> to vector<8x4xi32>
      %63 = arith.cmpi eq, %61, %62 : vector<8x4xi32>
      %64 = arith.extui %63 : vector<8x4xi1> to vector<8x4xi32>
      %65 = arith.sitofp %64 : vector<8x4xi32> to vector<8x4xf32>
      %66 = arith.mulf %57, %65 : vector<8x4xf32>
      %cst_32 = arith.constant dense<0.000000e+00> : vector<8xf32>
      %67 = vector.multi_reduction <add>, %66, %cst_32 [1] : vector<8x4xf32> to vector<8xf32>
      %68 = vector.shape_cast %67 : vector<8xf32> to vector<8x1xf32>
      %cst_33 = arith.constant 0.000000e+00 : f32
      %69 = vector.broadcast %cst_33 : f32 to vector<8x1xf32>
      %70 = arith.subf %69, %68 : vector<8x1xf32>
      %c0_34 = arith.constant 0 : index
      %c0_35 = arith.constant 0 : index
      %71 = vector.load %arg7[%c0_34, %c0_35] : memref<8x1xf32, #tpu.memory_space<vmem>>, vector<8x1xf32>
      %cst_36 = arith.constant 6.250000e-04 : f32
      %72 = vector.broadcast %cst_36 : f32 to vector<8x1xf32>
      %73 = arith.mulf %72, %71 : vector<8x1xf32>
      %74 = arith.addf %70, %73 : vector<8x1xf32>
      %75 = tpu.concatenate %57, %58, %74 in 1 : vector<8x4xf32>, vector<8x4xf32>, vector<8x1xf32> -> vector<8x9xf32>
      %c0_37 = arith.constant 0 : index
      %c0_38 = arith.constant 0 : index
      %76 = vector.load %arg5[%c0_37, %c0_38] : memref<8x9xf32, #tpu.memory_space<vmem>>, vector<8x9xf32>
      tpu.vector_store %arg5[%c0_37, %c0_38], %75 {strides = array<i32>} : memref<8x9xf32, #tpu.memory_space<vmem>>, vector<8x9xf32>,
    } else {
    }
    return
  }
  func.func @transform_0(%arg0: i32, %arg1: i32) -> (i32, i32) {
    %c0_i32 = arith.constant 0 : i32
    %c0_i32_0 = arith.constant 0 : i32
    return %arg0, %c0_i32 : i32, i32
  }
  func.func @transform_1(%arg0: i32, %arg1: i32) -> (i32, i32) {
    %c0_i32 = arith.constant 0 : i32
    %c0_i32_0 = arith.constant 0 : i32
    return %arg1, %c0_i32 : i32, i32
  }
  func.func @transform_2(%arg0: i32, %arg1: i32) -> (i32, i32) {
    %c0_i32 = arith.constant 0 : i32
    %c0_i32_0 = arith.constant 0 : i32
    %c0_i32_1 = arith.constant 0 : i32
    return %c0_i32, %c0_i32_0 : i32, i32
  }
  func.func @transform_3(%arg0: i32, %arg1: i32) -> (i32, i32) {
    %c0_i32 = arith.constant 0 : i32
    %c0_i32_0 = arith.constant 0 : i32
    return %arg0, %c0_i32 : i32, i32
  }
}

</mosaic_0001>

<bundles_post_ra>
// kernel: tpu_custom_call.1
= control target key start
LH: loop header
LB: loop body
LE: loop exit
PB: predicated region body
PF: predicated region fallthrough
CT: control target
= control target key end

     0   :  { %s507_s0 = inlined_call_operand.vmem [shape: f32[8,33], index: 0, kind: input, shape index: {}]   ;;  %s508_s1 = inlined_call_operand.vmem [shape: f32[8,33], index: 1, kind: input, shape index: {}]   ;;  %s509_s2 = inlined_call_operand.vmem [shape: f32[80,32], index: 2, kind: input, shape index: {}]   ;;  %s510_s3 = inlined_call_operand.hbm [shape: f32[8,9], index: 3, kind: output, shape index: {}]  }
   0x1   :  { %v18_v0 = vld [vmem:[%s509_s2 + $0x18] sm:$0xff]  ;;  %v17_v1 = vld [vmem:[%s509_s2 + $0x10] sm:$0xff]  ;;  %v16_v2 = vld [vmem:[%s509_s2 + $0x8] sm:$0xff] }
   0x2   :  { %47 = vmatpush.msra.mxu0 %v18_v0  ;;  %108 = vmatpush.msra.mxu2 %v18_v0  ;;  %v23_v3 = vld [vmem:[%s509_s2 + $0x40] sm:$0xff] }
   0x4   :  { %48 = vmatpush.msra.mxu0 %v17_v1  ;;  %109 = vmatpush.msra.mxu2 %v17_v1 }
   0x5   :  { %8 = vsyncpa [#allocation6], 0  ;;  %v15_v4 = vld [vmem:[%s509_s2] sm:$0xff]  ;;  %72 = vmatpush.msra.mxu1 %v23_v3  ;;  %133 = vmatpush.msra.mxu3 %v23_v3  ;;  %vm31_vm0 = vcmask 261120   ;;  %v22_v7 = vld [vmem:[%s509_s2 + $0x38] sm:$0xff]  ;;  %v419_v17 = vmov 32   ;;  %v216_v44 = vlaneseq }
   0x6   :  { %49 = vmatpush.msra.mxu0 %v16_v2  ;;  %110 = vmatpush.msra.mxu2 %v16_v2  ;;  %v29_v5 = vld [vmem:[%s507_s0] sm:$0xff]  ;;  %v21_v8 = vld [vmem:[%s509_s2 + $0x30] sm:$0xff]  ;;  %v20_v9 = vld [vmem:[%s509_s2 + $0x28] sm:$0xff]  ;;  %vm80_vm1 = vcmask 31744   ;;  %v421_v32 = vmov 0   ;;  %v422_v33 = vmov 0.0  }
   0x7   :  { %v467_v6 = vld [vmem:[%s508_s1] sm:$0xff]  ;;  %73 = vmatpush.msra.mxu1 %v22_v7  ;;  %134 = vmatpush.msra.mxu3 %v22_v7  ;;  %v386_v18 = vld [vmem:[%s509_s2 + $0x48] ss:$0 sm:$0xff]  ;;  %v371_v28 = vceil.f32 %v29_v5  ;;  %v372_v29 = vfloor.f32 %v29_v5  ;;  %vm370_vm2 = vcmp.lt.s32.totalorder %v29_v5, 0  ;;  %89 = vst.msk [vmem:[#allocation4] sm:$0xff] %vm80_vm1, %v422_v33  ;;  %vm87_vm3 = vcmask 7168  }
   0x8   :  { %50 = vmatpush.msra.mxu0 %v15_v4  ;;  %111 = vmatpush.msra.mxu2 %v15_v4  ;;  %v385_v10 = vld [vmem:[%s509_s2 + $0x20] ss:$0 sm:$0xff]  ;;  %s420_s2 = smov 4   ;;  %v366_v36 = vceil.f32 %v467_v6  ;;  %v367_v37 = vfloor.f32 %v467_v6  ;;  %vm365_vm4 = vcmp.lt.s32.totalorder %v467_v6, 0  ;;  %v217_v45 = vand.u32 127, %v216_v44  ;;  %s424_s7 = smov 8  }
   0x9   :  { %353 = vmatmul.msk.f32.vlgmr.msra.gmra.mxu0 %vm31_vm0, %v29_v5  ;;  %355 = vmatmul.msk.f32.vlgmr.msra.gmra.mxu2 %vm31_vm0, %v467_v6  ;;  %v373_v30 = vsel %vm370_vm2, %v371_v28, %v372_v29  ;;  %v423_v47 = vmov 1.0   ;;  %v264_v54 = vshrl.u32 %v216_v44, 7  ;;  %vm268_vm7 = vcmask 64512   ;;  %s425_s8 = smov [#allocation5]   ;;  %s344_s12 = sshll.u32 %s510_s3, 4  ;;  %s345_s12 = int_to_ptr.hbm [resolvable:$true] %s344_s12 }
   0xa   :  { %74 = vmatpush.msra.mxu1 %v21_v8  ;;  %135 = vmatpush.msra.mxu3 %v21_v8  ;;  %v374_v31 = vcvt.f32.s32 %v373_v30  ;;  %v368_v41 = vsel %vm365_vm4, %v366_v36, %v367_v37  ;;  %s342_s9 = sshll.u32 %s425_s8, 4  ;;  %vm335_vm9 = vcmask 72704   ;;  %s343_s9 = int_to_ptr.vmem [resolvable:$true] %s342_s9 }
   0xb   :  { %384 = vset.pattern.permute.xlu0 %v419_v17  ;;  %382 = vset.pattern.permute.xlu1 %v421_v32  ;;  %v369_v42 = vcvt.f32.s32 %v368_v41  ;;  %vm265_vm6 = vcmp.eq.s32.totalorder %v264_v54, %v217_v45 }
   0xc   :  { %75 = vmatpush.msra.mxu1 %v20_v9  ;;  %136 = vmatpush.msra.mxu3 %v20_v9 }
   0xe   :  { %v267_v57 = vld [vmem:[#allocation4] sm:$0xff] }
  0x86   :  { %v52_v11 = vpop.f32.mrf.mxu0 }
  0x87   :  { %v53_v12 = vadd.f32 %v385_v10, %v52_v11 }
  0x89   :  { %v55_v13 = vmax.f32 %v53_v12, 0.0 }
  0x8b   :  { %354 = vmatmul.msk.f32.vlgmr.msra.gmra.mxu1 %vm31_vm0, %v55_v13 }
  0x8c   :  { %v113_v14 = vpop.f32.mrf.mxu2 }
  0x8d   :  { %v114_v15 = vadd.f32 %v385_v10, %v113_v14 }
  0x8f   :  { %v116_v16 = vmax.f32 %v114_v15, 0.0 }
  0x91   :  { %356 = vmatmul.msk.f32.vlgmr.msra.gmra.mxu3 %vm31_vm0, %v116_v16 }
 0x108   :  { %v77_v19 = vpop.f32.mrf.mxu1 }
 0x109   :  { %v78_v20 = vadd.f32 %v386_v18, %v77_v19 }
 0x10b   :  { %81 = vst.msk [vmem:[#allocation2] sm:$0xff] %vm80_vm1, %v78_v20  ;;  %v82_v21 = vmul.f32 %v78_v20, %v78_v20 }
 0x10d   :  { %v83_v22 = vsel %vm80_vm1, %v82_v21, 0.0 }
 0x10e   :  { %84 = vadd.xlane.f32.xlu0 %v83_v22 }
 0x112   :  { %v147_v27 = vld [vmem:[#allocation2] sm:$0xff] }
 0x114   :  { %v138_v23 = vpop.f32.mrf.mxu3 }
 0x115   :  { %v139_v24 = vadd.f32 %v386_v18, %v138_v23 }
 0x117   :  { %357 = vmatpush.xpose.msk.msrb.mxu0 %vm80_vm1, %v139_v24  ;;  %v141_v25 = vmul.f32 %v139_v24, %v139_v24 }
 0x119   :  { %v143_v26 = vsel %vm80_vm1, %v141_v25, 0.0 }
 0x11a   :  { %144 = vadd.xlane.f32.xlu0 %v143_v26  ;;  %358 = vmatmul.msk.f32.vlgmr.msrb.gmra.mxu0 %vm80_vm1, %v147_v27 }
 0x12e   :  { %311 = vperm.xlu0 %384, %v374_v31  }
 0x136   :  { %325 = vrot.lane.b32.xlu0 %v147_v27, %s420_s2 }
 0x181   :  { %v85_v34 = vpop.xlane.xlu0 %84 }
 0x182   :  { %v86_v35 = vmul.f32 0.5, %v85_v34 }
 0x184   :  { %88 = vst.msk [vmem:[#allocation3] sm:$0xff] %vm87_vm3, %v86_v35 }
 0x18b   :  { %v174_v38 = vld [vmem:[#allocation3] sm:$0xff] }
 0x18c   :  { %177 = vperm.xlu1 %382, %v174_v38   ;;  %v322_v10 = vmul.f32 0.000625, %v174_v38 }
 0x18d   :  { %v145_v39 = vpop.xlane.xlu0 %144 }
 0x18e   :  { %v146_v40 = vmul.f32 0.5, %v145_v39 }
 0x190   :  { %181 = vxpose.xlu2.b32.start.end [1/1] (short) (narrow) %v146_v40, 8 }
 0x194   :  { %383 = vset.pattern.permute.xlu1 %v419_v17 }
 0x195   :  { %219 = vperm.xlu1 %383, %v369_v42  }
 0x197   :  { %v171_v48 = vpop.f32.mrf.mxu0 }
 0x1a0   :  { %v312_v1 = vpop.permute.xlu0 %311 }
 0x1a1   :  { %vm313_vm8 = vcmp.eq.s32.totalorder %v217_v45, %v312_v1 }
 0x1a2   :  { %v364_v5 = vsel %vm313_vm8, 1.0, %v422_v33 }
 0x1a8   :  { %v326_v13 = vpop.permute.xlu0 %325 }
 0x1fe   :  { %v178_v43 = vpop.permute.xlu1 %177 }
 0x1ff   :  { %v180_v50 = vsub.f32 %v171_v48, %v178_v43 }
 0x207   :  { %v220_v46 = vpop.permute.xlu1 %219 }
 0x208   :  { %vm221_vm5 = vcmp.eq.s32.totalorder %v217_v45, %v220_v46 }
 0x209   :  { %362 = vmatpush.msk.msrb.mxu1 %vm221_vm5, %v423_v47 }
 0x229   :  { %v197_v49 = vpop.trf.xlu2 }
 0x22a   :  { %v213_v51 = vperm.slane %v197_v49, 0 }
 0x22c   :  { %v214_v52 = vsub.f32 %v180_v50, %v213_v51 }
 0x22e   :  { %v261_v53 = vmul.f32 1.442695, %v214_v52 }
 0x230   :  { %387 = vpow2.f32 %v261_v53 }
 0x236   :  { %v388_v55 = vpop.eup %387 }
 0x237   :  { %v266_v56 = vsel %vm265_vm6, 0.0, %v388_v55 }
 0x238   :  { %363 = vmatmul.msk.f32.vlgmr.msrb.gmra.mxu1 %vm268_vm7, %v266_v56 }
 0x2b5   :  { %v289_v58 = vpop.f32.mrf.mxu1 }
 0x2b6   :  { %v292_v59 = vadd.f32 %v289_v58, %v267_v57 }
 0x2b8   :  { %293 = vst.msk [vmem:[#allocation4] sm:$0xff] %vm80_vm1, %v292_v59 }
 0x2bf   :  { %v297_v60 = vld [vmem:[#allocation4] sm:$0xff] }
 0x2c0   :  { %v298_v61 = vadd.f32 1e-08, %v297_v60 }
 0x2c2   :  { %v301_v62 = vsel %vm80_vm1, %v298_v61, 0.0  ;;  %389 = vlog2.f32 %v298_v61 }
 0x2c3   :  { %302 = vadd.xlane.f32.xlu2 %v301_v62 }
 0x2c8   :  { %v390_v0 = vpop.eup %389 }
 0x2c9   :  { %v300_v3 = vmul.f32 0.6931472, %v390_v0 }
 0x336   :  { %v303_v63 = vpop.xlane.xlu2 %302 }
 0x337   :  { %391 = vlog2.f32 %v303_v63 }
 0x33d   :  { %v392_v2 = vpop.eup %391 }
 0x33e   :  { %v305_v4 = vmul.f32 0.6931472, %v392_v2 }
 0x340   :  { %v306_v6 = vsub.f32 %v300_v3, %v305_v4 }
 0x342   :  { %v316_v7 = vmul.f32 %v364_v5, %v306_v6  ;;  %v332_v14 = vsel %vm80_vm1, %v306_v6, %v326_v13 }
 0x344   :  { %v317_v8 = vsel %vm80_vm1, %v316_v7, 0.0 }
 0x345   :  { %318 = vadd.xlane.f32.xlu1 %v317_v8 }
 0x3b8   :  { %v319_v9 = vpop.xlane.xlu1 %318 }
 0x3b9   :  { %v320_v11 = vsub.f32 0.0, %v319_v9 }
 0x3bb   :  { %v323_v12 = vadd.f32 %v322_v10, %v320_v11 }
 0x3bd   :  { %329 = vrot.lane.b32.xlu1 %v323_v12, %s424_s7 }
 0x42f   :  { %v330_v15 = vpop.permute.xlu1 %329 }
 0x430   :  { %v334_v16 = vsel %vm268_vm7, %v332_v14, %v330_v15 }
 0x431   :  { %336 = vst.msk [vmem:[#allocation5] sm:$0xff] %vm335_vm9, %v334_v16 }
 0x432   :  { %347 = dma.vmem_to_hbm [thread:$0]  %s343_s9, 128, %s345_s12, [#allocation6]  }
 0x433   :  { %417 = dma.done.wait [#allocation6], 128  }
 0x434   :  { %418 = vsyncadd [#allocation6], 4294967168 }
 0x435   :  { %352 = vsyncpa [#allocation6], 1 }

</bundles_post_ra>
